<compile_context>
chip_gen: v7x
topology: tpu7x:2x2x1
jax: 0.10.0
libtpu: 0.0.40
codegen_flags: <defaults>
</compile_context>

<pallas_src>
import functools

import jax
import jax.numpy as jnp
from jax.experimental import pallas as pl
from jax.experimental.pallas import tpu as pltpu


def _input_gate_kernel(x_ref, h_ref, wxi_ref, whi_ref, wxc_ref, whc_ref,
                       bi_ref, bc_ref, it_ref, ct_ref, *, compute_dtype):
    """it = sigmoid(x@Wii + h@Whi + bi), ct = tanh(x@Wic + h@Whc + bc)."""
    x = x_ref[...]
    h = h_ref[...]
    wxi = wxi_ref[...]
    whi = whi_ref[...]
    wxc = wxc_ref[...]
    whc = whc_ref[...]
    if compute_dtype is not None:
        # In-kernel cast of MXU operands (avoids an extra wrapper-side HBM pass).
        x, h = x.astype(compute_dtype), h.astype(compute_dtype)
        wxi, whi = wxi.astype(compute_dtype), whi.astype(compute_dtype)
        wxc, whc = wxc.astype(compute_dtype), whc.astype(compute_dtype)

    # f32 accumulation on the MXU regardless of operand dtype.
    zi = (jnp.dot(x, wxi, preferred_element_type=jnp.float32)
          + jnp.dot(h, whi, preferred_element_type=jnp.float32)
          + bi_ref[...].astype(jnp.float32))
    zc = (jnp.dot(x, wxc, preferred_element_type=jnp.float32)
          + jnp.dot(h, whc, preferred_element_type=jnp.float32)
          + bc_ref[...].astype(jnp.float32))

    # sigmoid(z) = 0.5 * tanh(0.5 * z) + 0.5  -> one EUP tanh per gate element.
    it_ref[...] = (0.5 * jnp.tanh(0.5 * zi) + 0.5).astype(it_ref.dtype)
    ct_ref[...] = jnp.tanh(zc).astype(ct_ref.dtype)


def fold_input_gate_params(w_ii, b_ii, w_hi, b_hi, b_i,
                           w_ic, b_ic, w_hc, b_hc, b_c, *, weight_dtype=None):
    """One-time parameter folding (keep this OUT of the per-timestep hot path).

    Weights must already be pre-transposed to [in_features, out_features]
    (PyTorch nn.Linear stores [out, in]; transpose once at load time).
    Returns (w_ii, w_hi, w_ic, w_hc, b_i_fused[1,H], b_c_fused[1,H]).
    """
    b_i_f = (b_ii + b_hi + b_i).reshape(1, -1)
    b_c_f = (b_ic + b_hc + b_c).reshape(1, -1)
    if weight_dtype is not None:
        w_ii, w_hi, w_ic, w_hc = (w.astype(weight_dtype)
                                  for w in (w_ii, w_hi, w_ic, w_hc))
    return (w_ii, w_hi, w_ic, w_hc, b_i_f, b_c_f)


def _pick_tile(dim, preferred, align):
    """Largest multiple of `align` <= preferred that divides `dim`, else full dim."""
    if dim <= preferred:
        return dim
    t = (preferred // align) * align
    while t >= align:
        if dim % t == 0:
            return t
        t -= align
    return dim


def input_gate(x, ht, folded_params, *, tm=None, tn=None, compute_dtype=None):
    """
    x: [B, I], ht: [B, H]; folded_params from fold_input_gate_params().
    Returns (it, ct), each [B, H].
    """
    w_ii, w_hi, w_ic, w_hc, b_i_f, b_c_f = folded_params
    B, I = x.shape
    Bh, Hin = ht.shape
    H = w_ii.shape[1]
    assert B == Bh
    assert w_ii.shape == (I, H) and w_ic.shape == (I, H)
    assert w_hi.shape == (Hin, H) and w_hc.shape == (Hin, H)
    assert b_i_f.shape == (1, H) and b_c_f.shape == (1, H)

    # K (= I and Hin) is kept VMEM-resident: no K grid axis / accumulator.
    # TODO(synk): add a K-tiled accumulator variant for I+H too large for VMEM.
    if tm is None:
        tm = _pick_tile(B, 256, 8)
    if tn is None:
        tn = _pick_tile(H, 256, 128)
    assert B % tm == 0 and H % tn == 0

    grid = (B // tm, H // tn)

    # Rough double-buffered VMEM footprint -> raise scoped VMEM limit if needed.
    act_isz = jnp.dtype(x.dtype).itemsize
    w_isz = jnp.dtype(w_ii.dtype).itemsize
    est = 2 * (tm * (I + Hin) * act_isz          # x, ht tiles
               + 2 * (I + Hin) * tn * w_isz      # four weight tiles
               + 2 * tm * tn * act_isz           # it, ct output tiles
               + 2 * tn * 4)                     # fused biases
    vmem_limit = int(min(max(2 * est, 32 * 1024 * 1024), 64 * 1024 * 1024))

    kernel = functools.partial(_input_gate_kernel, compute_dtype=compute_dtype)

    it, ct = pl.pallas_call(
        kernel,
        out_shape=(jax.ShapeDtypeStruct((B, H), x.dtype),
                   jax.ShapeDtypeStruct((B, H), x.dtype)),
        grid=grid,
        in_specs=[
            pl.BlockSpec((tm, I), lambda i, j: (i, 0)),      # x
            pl.BlockSpec((tm, Hin), lambda i, j: (i, 0)),    # ht
            pl.BlockSpec((I, tn), lambda i, j: (0, j)),      # w_ii
            pl.BlockSpec((Hin, tn), lambda i, j: (0, j)),    # w_hi
            pl.BlockSpec((I, tn), lambda i, j: (0, j)),      # w_ic
            pl.BlockSpec((Hin, tn), lambda i, j: (0, j)),    # w_hc
            pl.BlockSpec((1, tn), lambda i, j: (0, j)),      # b_i fused
            pl.BlockSpec((1, tn), lambda i, j: (0, j)),      # b_c fused
        ],
        out_specs=(pl.BlockSpec((tm, tn), lambda i, j: (i, j)),   # it
                   pl.BlockSpec((tm, tn), lambda i, j: (i, j))),  # ct
        compiler_params=pltpu.CompilerParams(
            dimension_semantics=("parallel", "parallel"),
            vmem_limit_bytes=vmem_limit),
    )(x, ht, w_ii, w_hi, w_ic, w_hc, b_i_f, b_c_f)

    return it, ct


def reference(x, ht, w_ii, b_ii, w_hi, b_hi, b_i, w_ic, b_ic, w_hc, b_hc, b_c):
    hi = jax.lax.Precision.HIGHEST
    it = jax.nn.sigmoid(jnp.dot(x, w_ii, precision=hi) + b_ii
                        + jnp.dot(ht, w_hi, precision=hi) + b_hi + b_i)
    ct = jnp.tanh(jnp.dot(x, w_ic, precision=hi) + b_ic
                  + jnp.dot(ht, w_hc, precision=hi) + b_hc + b_c)
    return it, ct


if __name__ == "__main__":
    # Small but lane-dense / sublane-full shapes (H multiple of 128, B multiple
    # of 8) so stores are unmasked and MXU tiles are well formed.
    input_size = 128
    hidden_size = 128
    batch = 8

    key = jax.random.PRNGKey(0)
    k = jax.random.split(key, 12)

    x = jax.random.normal(k[0], (batch, input_size), jnp.float32)
    ht = jax.random.normal(k[1], (batch, hidden_size), jnp.float32)

    # PyTorch nn.Linear init bounds: U(-1/sqrt(fan_in), 1/sqrt(fan_in)).
    # Weights stored pre-transposed as [in, out].
    bi = 1.0 / (input_size ** 0.5)
    bh = 1.0 / (hidden_size ** 0.5)
    w_ii = jax.random.uniform(k[2], (input_size, hidden_size), jnp.float32, -bi, bi)
    b_ii = jax.random.uniform(k[3], (hidden_size,), jnp.float32, -bi, bi)
    w_hi = jax.random.uniform(k[4], (hidden_size, hidden_size), jnp.float32, -bh, bh)
    b_hi = jax.random.uniform(k[5], (hidden_size,), jnp.float32, -bh, bh)
    b_i = jnp.zeros((hidden_size,), jnp.float32)           # nn.Parameter(zeros)
    w_ic = jax.random.uniform(k[6], (input_size, hidden_size), jnp.float32, -bi, bi)
    b_ic = jax.random.uniform(k[7], (hidden_size,), jnp.float32, -bi, bi)
    w_hc = jax.random.uniform(k[8], (hidden_size, hidden_size), jnp.float32, -bh, bh)
    b_hc = jax.random.uniform(k[9], (hidden_size,), jnp.float32, -bh, bh)
    b_c = jnp.zeros((hidden_size,), jnp.float32)            # nn.Parameter(zeros)

    # One-time folding (outside the per-timestep hot path).
    folded = fold_input_gate_params(w_ii, b_ii, w_hi, b_hi, b_i,
                                    w_ic, b_ic, w_hc, b_hc, b_c)

    it, ct = input_gate(x, ht, folded)
    it, ct = jax.block_until_ready((it, ct))

    it_ref, ct_ref = reference(x, ht, w_ii, b_ii, w_hi, b_hi, b_i,
                               w_ic, b_ic, w_hc, b_hc, b_c)

    assert it.shape == (batch, hidden_size) and ct.shape == (batch, hidden_size)
    assert jnp.allclose(it, it_ref, atol=1e-2, rtol=1e-2), "it mismatch vs reference"
    assert jnp.allclose(ct, ct_ref, atol=1e-2, rtol=1e-2), "ct mismatch vs reference"

    print("KERNEL_OK")
</pallas_src>

<mosaic_0001>
module attributes {stable_mosaic.version = 11 : i64} {
  func.func @_input_gate_kernel(%arg0: i32, %arg1: i32, %arg2: memref<8x128xf32, #tpu.memory_space<vmem>>, %arg3: memref<8x128xf32, #tpu.memory_space<vmem>>, %arg4: memref<128x128xf32, #tpu.memory_space<vmem>>, %arg5: memref<128x128xf32, #tpu.memory_space<vmem>>, %arg6: memref<128x128xf32, #tpu.memory_space<vmem>>, %arg7: memref<128x128xf32, #tpu.memory_space<vmem>>, %arg8: memref<1x128xf32, #tpu.memory_space<vmem>>, %arg9: memref<1x128xf32, #tpu.memory_space<vmem>>, %arg10: memref<8x128xf32, #tpu.memory_space<vmem>>, %arg11: memref<8x128xf32, #tpu.memory_space<vmem>>) attributes {dimension_semantics = [#tpu.dimension_semantics<parallel>, #tpu.dimension_semantics<parallel>], iteration_bounds = array<i64: 1, 1>, scalar_prefetch = 0 : i64, scratch_operands = 0 : i64, tpu.core_type = #tpu.core_type<tc>, window_params = [{transform_indices = @transform_0, window_bounds = array<i64: 8, 128>}, {transform_indices = @transform_1, window_bounds = array<i64: 8, 128>}, {transform_indices = @transform_2, window_bounds = array<i64: 128, 128>}, {transform_indices = @transform_3, window_bounds = array<i64: 128, 128>}, {transform_indices = @transform_4, window_bounds = array<i64: 128, 128>}, {transform_indices = @transform_5, window_bounds = array<i64: 128, 128>}, {transform_indices = @transform_6, window_bounds = array<i64: 1, 128>}, {transform_indices = @transform_7, window_bounds = array<i64: 1, 128>}, {transform_indices = @transform_8, window_bounds = array<i64: 8, 128>}, {transform_indices = @transform_9, window_bounds = array<i64: 8, 128>}]} {
    %c0 = arith.constant 0 : index
    %c0_0 = arith.constant 0 : index
    %0 = vector.load %arg2[%c0, %c0_0] : memref<8x128xf32, #tpu.memory_space<vmem>>, vector<8x128xf32>
    %c0_1 = arith.constant 0 : index
    %c0_2 = arith.constant 0 : index
    %1 = vector.load %arg3[%c0_1, %c0_2] : memref<8x128xf32, #tpu.memory_space<vmem>>, vector<8x128xf32>
    %c0_3 = arith.constant 0 : index
    %c0_4 = arith.constant 0 : index
    %2 = vector.load %arg4[%c0_3, %c0_4] : memref<128x128xf32, #tpu.memory_space<vmem>>, vector<128x128xf32>
    %c0_5 = arith.constant 0 : index
    %c0_6 = arith.constant 0 : index
    %3 = vector.load %arg5[%c0_5, %c0_6] : memref<128x128xf32, #tpu.memory_space<vmem>>, vector<128x128xf32>
    %c0_7 = arith.constant 0 : index
    %c0_8 = arith.constant 0 : index
    %4 = vector.load %arg6[%c0_7, %c0_8] : memref<128x128xf32, #tpu.memory_space<vmem>>, vector<128x128xf32>
    %c0_9 = arith.constant 0 : index
    %c0_10 = arith.constant 0 : index
    %5 = vector.load %arg7[%c0_9, %c0_10] : memref<128x128xf32, #tpu.memory_space<vmem>>, vector<128x128xf32>
    %cst = arith.constant dense<0.000000e+00> : vector<8x128xf32>
    %6 = tpu.matmul %0, %2, %cst {dimension_numbers = #tpu.dot_dimension_numbers<[1], [0], [0], [1], [0, 0, 1, 1], [], []>} : vector<8x128xf32>, vector<128x128xf32>, vector<8x128xf32> -> vector<8x128xf32>
    %cst_11 = arith.constant dense<0.000000e+00> : vector<8x128xf32>
    %7 = tpu.matmul %1, %3, %cst_11 {dimension_numbers = #tpu.dot_dimension_numbers<[1], [0], [0], [1], [0, 0, 1, 1], [], []>} : vector<8x128xf32>, vector<128x128xf32>, vector<8x128xf32> -> vector<8x128xf32>
    %8 = arith.addf %6, %7 : vector<8x128xf32>
    %c0_12 = arith.constant 0 : index
    %c0_13 = arith.constant 0 : index
    %9 = vector.load %arg8[%c0_12, %c0_13] : memref<1x128xf32, #tpu.memory_space<vmem>>, vector<1x128xf32>
    %10 = vector.broadcast %9 : vector<1x128xf32> to vector<8x128xf32>
    %11 = arith.addf %8, %10 : vector<8x128xf32>
    %cst_14 = arith.constant dense<0.000000e+00> : vector<8x128xf32>
    %12 = tpu.matmul %0, %4, %cst_14 {dimension_numbers = #tpu.dot_dimension_numbers<[1], [0], [0], [1], [0, 0, 1, 1], [], []>} : vector<8x128xf32>, vector<128x128xf32>, vector<8x128xf32> -> vector<8x128xf32>
    %cst_15 = arith.constant dense<0.000000e+00> : vector<8x128xf32>
    %13 = tpu.matmul %1, %5, %cst_15 {dimension_numbers = #tpu.dot_dimension_numbers<[1], [0], [0], [1], [0, 0, 1, 1], [], []>} : vector<8x128xf32>, vector<128x128xf32>, vector<8x128xf32> -> vector<8x128xf32>
    %14 = arith.addf %12, %13 : vector<8x128xf32>
    %c0_16 = arith.constant 0 : index
    %c0_17 = arith.constant 0 : index
    %15 = vector.load %arg9[%c0_16, %c0_17] : memref<1x128xf32, #tpu.memory_space<vmem>>, vector<1x128xf32>
    %16 = vector.broadcast %15 : vector<1x128xf32> to vector<8x128xf32>
    %17 = arith.addf %14, %16 : vector<8x128xf32>
    %cst_18 = arith.constant 5.000000e-01 : f32
    %18 = vector.broadcast %cst_18 : f32 to vector<8x128xf32>
    %19 = arith.mulf %18, %11 : vector<8x128xf32>
    %20 = math.tanh %19 : vector<8x128xf32>
    %cst_19 = arith.constant 5.000000e-01 : f32
    %21 = vector.broadcast %cst_19 : f32 to vector<8x128xf32>
    %22 = arith.mulf %21, %20 : vector<8x128xf32>
    %cst_20 = arith.constant 5.000000e-01 : f32
    %23 = vector.broadcast %cst_20 : f32 to vector<8x128xf32>
    %24 = arith.addf %22, %23 : vector<8x128xf32>
    %c0_21 = arith.constant 0 : index
    %c0_22 = arith.constant 0 : index
    %25 = vector.load %arg10[%c0_21, %c0_22] : memref<8x128xf32, #tpu.memory_space<vmem>>, vector<8x128xf32>
    tpu.vector_store %arg10[%c0_21, %c0_22], %24 {strides = array<i32>} : memref<8x128xf32, #tpu.memory_space<vmem>>, vector<8x128xf32>,
    %26 = math.tanh %17 : vector<8x128xf32>
    %c0_23 = arith.constant 0 : index
    %c0_24 = arith.constant 0 : index
    %27 = vector.load %arg11[%c0_23, %c0_24] : memref<8x128xf32, #tpu.memory_space<vmem>>, vector<8x128xf32>
    tpu.vector_store %arg11[%c0_23, %c0_24], %26 {strides = array<i32>} : memref<8x128xf32, #tpu.memory_space<vmem>>, vector<8x128xf32>,
    return
  }
  func.func @transform_0(%arg0: i32, %arg1: i32) -> (i32, i32) {
    %c0_i32 = arith.constant 0 : i32
    %c0_i32_0 = arith.constant 0 : i32
    return %arg0, %c0_i32 : i32, i32
  }
  func.func @transform_1(%arg0: i32, %arg1: i32) -> (i32, i32) {
    %c0_i32 = arith.constant 0 : i32
    %c0_i32_0 = arith.constant 0 : i32
    return %arg0, %c0_i32 : i32, i32
  }
  func.func @transform_2(%arg0: i32, %arg1: i32) -> (i32, i32) {
    %c0_i32 = arith.constant 0 : i32
    %c0_i32_0 = arith.constant 0 : i32
    return %c0_i32, %arg1 : i32, i32
  }
  func.func @transform_3(%arg0: i32, %arg1: i32) -> (i32, i32) {
    %c0_i32 = arith.constant 0 : i32
    %c0_i32_0 = arith.constant 0 : i32
    return %c0_i32, %arg1 : i32, i32
  }
  func.func @transform_4(%arg0: i32, %arg1: i32) -> (i32, i32) {
    %c0_i32 = arith.constant 0 : i32
    %c0_i32_0 = arith.constant 0 : i32
    return %c0_i32, %arg1 : i32, i32
  }
  func.func @transform_5(%arg0: i32, %arg1: i32) -> (i32, i32) {
    %c0_i32 = arith.constant 0 : i32
    %c0_i32_0 = arith.constant 0 : i32
    return %c0_i32, %arg1 : i32, i32
  }
  func.func @transform_6(%arg0: i32, %arg1: i32) -> (i32, i32) {
    %c0_i32 = arith.constant 0 : i32
    %c0_i32_0 = arith.constant 0 : i32
    return %c0_i32, %arg1 : i32, i32
  }
  func.func @transform_7(%arg0: i32, %arg1: i32) -> (i32, i32) {
    %c0_i32 = arith.constant 0 : i32
    %c0_i32_0 = arith.constant 0 : i32
    return %c0_i32, %arg1 : i32, i32
  }
  func.func @transform_8(%arg0: i32, %arg1: i32) -> (i32, i32) {
    %c0_i32 = arith.constant 0 : i32
    return %arg0, %arg1 : i32, i32
  }
  func.func @transform_9(%arg0: i32, %arg1: i32) -> (i32, i32) {
    %c0_i32 = arith.constant 0 : i32
    return %arg0, %arg1 : i32, i32
  }
}

</mosaic_0001>

<bundles_post_ra>
// kernel: tpu_custom_call.1
= control target key start
LH: loop header
LB: loop body
LE: loop exit
PB: predicated region body
PF: predicated region fallthrough
CT: control target
= control target key end

     0   :  { %15 = vsyncpa [#allocation3], 0  ;;  %s1248_s0 = inlined_call_operand.hbm [shape: f32[8,128], index: 0, kind: input, shape index: {}]   ;;  %s1249_s1 = inlined_call_operand.hbm [shape: f32[8,128], index: 1, kind: input, shape index: {}]   ;;  %s1250_s2 = inlined_call_operand.hbm [shape: f32[128,128], index: 2, kind: input, shape index: {}]   ;;  %s1251_s3 = inlined_call_operand.hbm [shape: f32[128,128], index: 3, kind: input, shape index: {}]   ;;  %s1252_s4 = inlined_call_operand.hbm [shape: f32[128,128], index: 4, kind: input, shape index: {}]   ;;  %s1253_s5 = inlined_call_operand.hbm [shape: f32[128,128], index: 5, kind: input, shape index: {}]   ;;  %s1254_s6 = inlined_call_operand.vmem [shape: f32[1,128], index: 6, kind: input, shape index: {}]   ;;  %s1255_s7 = inlined_call_operand.vmem [shape: f32[1,128], index: 7, kind: input, shape index: {}]   ;;  %s1256_s8 = inlined_call_operand.hbm [shape: f32[8,128], index: 8, kind: output, shape index: {0}]   ;;  %s1257_s9 = inlined_call_operand.hbm [shape: f32[8,128], index: 9, kind: output, shape index: {1}]  }
   0x1   :  { %16 = vsyncpa [#allocation6], 0 }
   0x2   :  { %17 = vsyncpa [#allocation9], 0 }
   0x3   :  { %18 = vsyncpa [#allocation12], 0 }
   0x4   :  { %19 = vsyncpa [#allocation4], 0 }
   0x5   :  { %20 = vsyncpa [#allocation15], 0  ;;  %s1023_s30 = smov [#allocation5]   ;;  %s835_s13 = scalar_lea.hbm %s1249_s1, 128 }
   0x6   :  { %s37_s10 = sshll.u32 %s1023_s30, 4  ;;  %p836_p0 = scmp.ne.s32.totalorder %s1249_s1, %s835_s13  ;;  %s38_s10 = int_to_ptr.vmem [resolvable:$true] %s37_s10 }
   0x7   :  { %p839_p1 = scmp.lt.u32.totalorder %s835_s13, %s1249_s1 }
   0x9   :  { %p841_p2 = pnand %p839_p1, %p836_p0 }
   0xb   :  { %844 = shalt.err (!%p841_p2)
}
   0xc   :  { %s845_s18 = scalar_lea.vmem %s38_s10, 128  ;;  %p850_p4 = scmp.lt.s32.totalorder %s38_s10, %s38_s10 }
   0xd   :  { %p846_p3 = scmp.ne.s32.totalorder %s38_s10, %s845_s18  ;;  %p851_p5 = scmp.lt.s32.totalorder %s845_s18, %s845_s18 }
   0xf   :  { %p852_p6 = por %p851_p5, %p850_p4 }
  0x11   :  { %p853_p7 = pnand %p852_p6, %p846_p3 }
  0x13   :  { %856 = shalt.err (!%p853_p7)
}
  0x14   :  { %40 = dma.hbm_to_vmem [thread:$0]  %s1249_s1, 128, %s38_s10, [#allocation6]  }
  0x15   :  { %s1024_s21 = smov [#allocation8]   ;;  %s1025_s23 = smov [#allocation2]  }
  0x16   :  { %s58_s22 = sshll.u32 %s1024_s21, 4  ;;  %s27_s24 = sshll.u32 %s1025_s23, 4  ;;  %s59_s22 = int_to_ptr.vmem [resolvable:$true] %s58_s22  ;;  %s28_s24 = int_to_ptr.vmem [resolvable:$true] %s27_s24 }
  0x17   :  { %s857_s27 = scalar_lea.hbm %s1251_s3, 2048 }
  0x18   :  { %p858_p8 = scmp.ne.s32.totalorder %s1251_s3, %s857_s27  ;;  %p861_p9 = scmp.lt.u32.totalorder %s857_s27, %s1251_s3 }
  0x1a   :  { %p863_p10 = pnand %p861_p9, %p858_p8 }
  0x1c   :  { %866 = shalt.err (!%p863_p10)
}
  0x1d   :  { %s867_s1 = scalar_lea.vmem %s59_s22, 2048  ;;  %p872_p12 = scmp.lt.s32.totalorder %s59_s22, %s59_s22 }
  0x1e   :  { %p868_p11 = scmp.ne.s32.totalorder %s59_s22, %s867_s1  ;;  %p873_p13 = scmp.lt.s32.totalorder %s867_s1, %s867_s1 }
  0x20   :  { %p874_p0 = por %p873_p13, %p872_p12 }
  0x22   :  { %p875_p1 = pnand %p874_p0, %p868_p11 }
  0x24   :  { %878 = shalt.err (!%p875_p1)
}
  0x25   :  { %s1026_s10 = smov 128   ;;  %s1027_s12 = smov 8  }
  0x26   :  { %64 = dma.hbm_to_vmem [thread:$0]  %s1251_s3, 2048, %s59_s22, [#allocation9], %s1026_s10, %s1026_s10, %s1027_s12  }
  0x27   :  { %s879_s17 = scalar_lea.hbm %s1248_s0, 128 }
  0x28   :  { %p880_p2 = scmp.ne.s32.totalorder %s1248_s0, %s879_s17  ;;  %p883_p3 = scmp.lt.u32.totalorder %s879_s17, %s1248_s0 }
  0x2a   :  { %p885_p4 = pnand %p883_p3, %p880_p2 }
  0x2c   :  { %888 = shalt.err (!%p885_p4)
}
  0x2d   :  { %s889_s23 = scalar_lea.vmem %s28_s24, 128  ;;  %p894_p6 = scmp.lt.s32.totalorder %s28_s24, %s28_s24 }
  0x2e   :  { %p890_p5 = scmp.ne.s32.totalorder %s28_s24, %s889_s23  ;;  %p895_p7 = scmp.lt.s32.totalorder %s889_s23, %s889_s23 }
  0x30   :  { %p896_p8 = por %p895_p7, %p894_p6 }
  0x32   :  { %p897_p9 = pnand %p896_p8, %p890_p5 }
  0x34   :  { %900 = shalt.err (!%p897_p9)
}
  0x35   :  { %30 = dma.hbm_to_vmem [thread:$0]  %s1248_s0, 128, %s28_s24, [#allocation3]  }
  0x36   :  { %s1028_s25 = smov [#allocation7]   ;;  %s1029_s27 = smov [#allocation10]  }
  0x37   :  { %s46_s26 = sshll.u32 %s1028_s25, 4  ;;  %s70_s28 = sshll.u32 %s1029_s27, 4  ;;  %s47_s26 = int_to_ptr.vmem [resolvable:$true] %s46_s26  ;;  %s71_s28 = int_to_ptr.vmem [resolvable:$true] %s70_s28 }
  0x38   :  { %s901_s11 = scalar_lea.hbm %s1250_s2, 2048 }
  0x39   :  { %p902_p10 = scmp.ne.s32.totalorder %s1250_s2, %s901_s11  ;;  %p905_p11 = scmp.lt.u32.totalorder %s901_s11, %s1250_s2 }
  0x3b   :  { %p907_p12 = pnand %p905_p11, %p902_p10 }
  0x3d   :  { %910 = shalt.err (!%p907_p12)
}
  0x3e   :  { %s911_s0 = scalar_lea.vmem %s47_s26, 2048  ;;  %p916_p0 = scmp.lt.s32.totalorder %s47_s26, %s47_s26 }
  0x3f   :  { %p912_p13 = scmp.ne.s32.totalorder %s47_s26, %s911_s0  ;;  %p917_p1 = scmp.lt.s32.totalorder %s911_s0, %s911_s0 }
  0x41   :  { %p918_p2 = por %p917_p1, %p916_p0 }
  0x43   :  { %p919_p3 = pnand %p918_p2, %p912_p13 }
  0x45   :  { %922 = shalt.err (!%p919_p3)
}
  0x46   :  { %52 = dma.hbm_to_vmem [thread:$0]  %s1250_s2, 2048, %s47_s26, [#allocation6], %s1026_s10, %s1026_s10, %s1027_s12  }
  0x47   :  { %s923_s19 = scalar_lea.hbm %s1252_s4, 2048 }
  0x48   :  { %p924_p4 = scmp.ne.s32.totalorder %s1252_s4, %s923_s19  ;;  %p927_p5 = scmp.lt.u32.totalorder %s923_s19, %s1252_s4 }
  0x4a   :  { %p929_p6 = pnand %p927_p5, %p924_p4 }
  0x4c   :  { %932 = shalt.err (!%p929_p6)
}
  0x4d   :  { %s933_s22 = scalar_lea.vmem %s71_s28, 2048  ;;  %p938_p8 = scmp.lt.s32.totalorder %s71_s28, %s71_s28 }
  0x4e   :  { %p934_p7 = scmp.ne.s32.totalorder %s71_s28, %s933_s22  ;;  %p939_p9 = scmp.lt.s32.totalorder %s933_s22, %s933_s22 }
  0x50   :  { %p940_p10 = por %p939_p9, %p938_p8 }
  0x52   :  { %p941_p11 = pnand %p940_p10, %p934_p7 }
  0x54   :  { %944 = shalt.err (!%p941_p11)
}
  0x55   :  { %76 = dma.hbm_to_vmem [thread:$0]  %s1252_s4, 2048, %s71_s28, [#allocation9], %s1026_s10, %s1026_s10, %s1027_s12  }
  0x56   :  { %s1030_s26 = smov [#allocation11]   ;;  %s945_s11 = scalar_lea.hbm %s1253_s5, 2048 }
  0x57   :  { %s82_s27 = sshll.u32 %s1030_s26, 4  ;;  %p946_p12 = scmp.ne.s32.totalorder %s1253_s5, %s945_s11  ;;  %s83_s27 = int_to_ptr.vmem [resolvable:$true] %s82_s27 }
  0x58   :  { %p949_p13 = scmp.lt.u32.totalorder %s945_s11, %s1253_s5 }
  0x5a   :  { %p951_p0 = pnand %p949_p13, %p946_p12 }
  0x5c   :  { %954 = shalt.err (!%p951_p0)
}
  0x5d   :  { %s955_s0 = scalar_lea.vmem %s83_s27, 2048  ;;  %p960_p2 = scmp.lt.s32.totalorder %s83_s27, %s83_s27 }
  0x5e   :  { %p956_p1 = scmp.ne.s32.totalorder %s83_s27, %s955_s0  ;;  %p961_p3 = scmp.lt.s32.totalorder %s955_s0, %s955_s0 }
  0x60   :  { %p962_p4 = por %p961_p3, %p960_p2 }
  0x62   :  { %p963_p5 = pnand %p962_p4, %p956_p1 }
  0x64   :  { %966 = shalt.err (!%p963_p5)
}
  0x65   :  { %88 = dma.hbm_to_vmem [thread:$0]  %s1253_s5, 2048, %s83_s27, [#allocation12], %s1026_s10, %s1026_s10, %s1027_s12  }
  0x66   :  { %1011 = dma.done.wait [#allocation3], 128  }
  0x67   :  { %1012 = vsyncadd [#allocation3], 4294967168 }
  0x68   :  { %1013 = dma.done.wait [#allocation6], 2176  }
  0x69   :  { %1014 = vsyncadd [#allocation6], 4294965120 }
  0x6a   :  { %1015 = dma.done.wait [#allocation9], 4096  }
  0x6b   :  { %1016 = vsyncadd [#allocation9], 4294963200 }
  0x6c   :  { %1017 = dma.done.wait [#allocation12], 2048  }
  0x6d   :  { %1018 = vsyncadd [#allocation12], 4294965248  ;;  %v1031_v0 = vmov 0.0|0.0   ;;  %vm1032_vm0 = vmmov 0   ;;  %v1033_v1 = vmov 0.0   ;;  %v129_v2 = vld [vmem:[#allocation8] sm:$0xff] }
  0x6e   :  { %722 = vmatprep.subr.bf16.mxu0 %v1031_v0  ;;  %746 = vmatprep.subr.bf16.mxu1 %v1031_v0  ;;  %v130_v3 = vld [vmem:[#allocation8 + $0x8] sm:$0xff]  ;;  %v113_v4 = vld [vmem:[#allocation7] sm:$0xff]  ;;  %v131_v7 = vld [vmem:[#allocation8 + $0x10] sm:$0xff]  ;;  %s1034_s12 = smov [#allocation13]  }
  0x6f   :  { %614 = vmatprep.mubr.msk.f32.mxu0 %vm1032_vm0, %v1033_v1  ;;  %649 = vmatprep.mubr.msk.f32.mxu1 %vm1032_vm0, %v1033_v1  ;;  %v723_v5 = vpack.c.bf16 %v130_v3, %v129_v2  ;;  %v114_v6 = vld [vmem:[#allocation7 + $0x8] sm:$0xff]  ;;  %v132_v8 = vld [vmem:[#allocation8 + $0x18] sm:$0xff]  ;;  %v115_v10 = vld [vmem:[#allocation7 + $0x10] sm:$0xff]  ;;  %s486_s24 = sshll.u32 %s1034_s12, 4  ;;  %s487_s24 = int_to_ptr.vmem [resolvable:$true] %s486_s24 }
  0x70   :  { %v747_v9 = vpack.c.bf16 %v114_v6, %v113_v4  ;;  %v116_v11 = vld [vmem:[#allocation7 + $0x18] sm:$0xff]  ;;  %v726_v12 = vpack.c.bf16 %v132_v8, %v131_v7  ;;  %v133_v14 = vld [vmem:[#allocation8 + $0x20] sm:$0xff]  ;;  %v134_v15 = vld [vmem:[#allocation8 + $0x28] sm:$0xff]  ;;  %s967_s16 = scalar_lea.vmem %s487_s24, 128  ;;  %p972_p7 = scmp.lt.s32.totalorder %s487_s24, %s487_s24 }
  0x71   :  { %724 = vmatpush3.bf16.msra.mxu0 %v723_v5  ;;  %v750_v13 = vpack.c.bf16 %v116_v11, %v115_v10  ;;  %v117_v16 = vld [vmem:[#allocation7 + $0x20] sm:$0xff]  ;;  %v118_v17 = vld [vmem:[#allocation7 + $0x28] sm:$0xff]  ;;  %v729_v18 = vpack.c.bf16 %v134_v15, %v133_v14  ;;  %v135_v20 = vld [vmem:[#allocation8 + $0x30] sm:$0xff]  ;;  %p968_p6 = scmp.ne.s32.totalorder %s487_s24, %s967_s16  ;;  %p973_p8 = scmp.lt.s32.totalorder %s967_s16, %s967_s16 }
  0x72   :  { %748 = vmatpush3.bf16.msra.mxu1 %v747_v9  ;;  %725 = vmatprep.subr.bf16.mxu0 %v1031_v0  ;;  %v753_v19 = vpack.c.bf16 %v118_v17, %v117_v16  ;;  %v136_v21 = vld [vmem:[#allocation8 + $0x38] sm:$0xff]  ;;  %v119_v22 = vld [vmem:[#allocation7 + $0x30] sm:$0xff]  ;;  %v137_v26 = vld [vmem:[#allocation8 + $0x40] sm:$0xff] }
  0x73   :  { %749 = vmatprep.subr.bf16.mxu1 %v1031_v0  ;;  %v120_v23 = vld [vmem:[#allocation7 + $0x38] sm:$0xff]  ;;  %v732_v24 = vpack.c.bf16 %v136_v21, %v135_v20  ;;  %v138_v27 = vld [vmem:[#allocation8 + $0x48] sm:$0xff]  ;;  %v121_v28 = vld [vmem:[#allocation7 + $0x40] sm:$0xff]  ;;  %p974_p9 = por %p973_p8, %p972_p7 }
  0x74   :  { %v756_v25 = vpack.c.bf16 %v120_v23, %v119_v22  ;;  %v122_v29 = vld [vmem:[#allocation7 + $0x48] sm:$0xff]  ;;  %v735_v30 = vpack.c.bf16 %v138_v27, %v137_v26  ;;  %v139_v32 = vld [vmem:[#allocation8 + $0x50] sm:$0xff]  ;;  %v140_v33 = vld [vmem:[#allocation8 + $0x58] sm:$0xff] }
  0x75   :  { %727 = vmatpush3.bf16.msra.mxu0 %v726_v12  ;;  %v759_v31 = vpack.c.bf16 %v122_v29, %v121_v28  ;;  %v123_v34 = vld [vmem:[#allocation7 + $0x50] sm:$0xff]  ;;  %v124_v35 = vld [vmem:[#allocation7 + $0x58] sm:$0xff]  ;;  %v738_v36 = vpack.c.bf16 %v140_v33, %v139_v32  ;;  %v141_v38 = vld [vmem:[#allocation8 + $0x60] sm:$0xff]  ;;  %p975_p10 = pnand %p974_p9, %p968_p6 }
  0x76   :  { %751 = vmatpush3.bf16.msra.mxu1 %v750_v13  ;;  %728 = vmatprep.subr.bf16.mxu0 %v1031_v0  ;;  %v762_v37 = vpack.c.bf16 %v124_v35, %v123_v34  ;;  %v142_v39 = vld [vmem:[#allocation8 + $0x68] sm:$0xff]  ;;  %v125_v40 = vld [vmem:[#allocation7 + $0x60] sm:$0xff]  ;;  %v143_v44 = vld [vmem:[#allocation8 + $0x70] sm:$0xff] }
  0x77   :  { %752 = vmatprep.subr.bf16.mxu1 %v1031_v0  ;;  %v126_v41 = vld [vmem:[#allocation7 + $0x68] sm:$0xff]  ;;  %v741_v42 = vpack.c.bf16 %v142_v39, %v141_v38  ;;  %v144_v45 = vld [vmem:[#allocation8 + $0x78] sm:$0xff]  ;;  %v127_v46 = vld [vmem:[#allocation7 + $0x70] sm:$0xff] }
  0x78   :  { %v765_v43 = vpack.c.bf16 %v126_v41, %v125_v40  ;;  %v128_v47 = vld [vmem:[#allocation7 + $0x78] sm:$0xff]  ;;  %v744_v48 = vpack.c.bf16 %v144_v45, %v143_v44  ;;  %v161_v50 = vld [vmem:[#allocation11] sm:$0xff]  ;;  %v162_v51 = vld [vmem:[#allocation11 + $0x8] sm:$0xff] }
  0x79   :  { %730 = vmatpush3.bf16.msra.mxu0 %v729_v18  ;;  %v768_v49 = vpack.c.bf16 %v128_v47, %v127_v46  ;;  %v145_v52 = vld [vmem:[#allocation10] sm:$0xff]  ;;  %v146_v53 = vld [vmem:[#allocation10 + $0x8] sm:$0xff]  ;;  %v1190_v54 = vld [vmem:[#allocation5] sm:$0xff]  ;;  %v771_v55 = vpack.c.bf16 %v162_v51, %v161_v50 }
  0x7a   :  { %754 = vmatpush3.bf16.msra.mxu1 %v753_v19  ;;  %731 = vmatprep.subr.bf16.mxu0 %v1031_v0  ;;  %v1192_v56 = vld [vmem:[#allocation2] sm:$0xff]  ;;  %v795_v57 = vpack.c.bf16 %v146_v53, %v145_v52  ;;  %v164_v59 = vld [vmem:[#allocation11 + $0x18] sm:$0xff]  ;;  %v165_v2 = vld [vmem:[#allocation11 + $0x20] sm:$0xff] }
  0x7b   :  { %755 = vmatprep.subr.bf16.mxu1 %v1031_v0  ;;  %v163_v58 = vld [vmem:[#allocation11 + $0x10] sm:$0xff]  ;;  %v148_v61 = vld [vmem:[#allocation10 + $0x18] sm:$0xff]  ;;  %v166_v3 = vld [vmem:[#allocation11 + $0x28] sm:$0xff] }
  0x7c   :  { %v147_v60 = vld [vmem:[#allocation10 + $0x10] sm:$0xff]  ;;  %v774_v62 = vpack.c.bf16 %v164_v59, %v163_v58  ;;  %v149_v4 = vld [vmem:[#allocation10 + $0x20] sm:$0xff]  ;;  %v150_v5 = vld [vmem:[#allocation10 + $0x28] sm:$0xff]  ;;  %v777_v6 = vpack.c.bf16 %v166_v3, %v165_v2 }
  0x7d   :  { %733 = vmatpush3.bf16.msra.mxu0 %v732_v24  ;;  %v798_v63 = vpack.c.bf16 %v148_v61, %v147_v60  ;;  %v801_v7 = vpack.c.bf16 %v150_v5, %v149_v4  ;;  %v167_v8 = vld [vmem:[#allocation11 + $0x30] sm:$0xff]  ;;  %v168_v9 = vld [vmem:[#allocation11 + $0x38] sm:$0xff]  ;;  %v169_v14 = vld [vmem:[#allocation11 + $0x40] sm:$0xff] }
  0x7e   :  { %757 = vmatpush3.bf16.msra.mxu1 %v756_v25  ;;  %734 = vmatprep.subr.bf16.mxu0 %v1031_v0  ;;  %v151_v10 = vld [vmem:[#allocation10 + $0x30] sm:$0xff]  ;;  %v152_v11 = vld [vmem:[#allocation10 + $0x38] sm:$0xff]  ;;  %v780_v12 = vpack.c.bf16 %v168_v9, %v167_v8  ;;  %v153_v15 = vld [vmem:[#allocation10 + $0x40] sm:$0xff] }
  0x7f   :  { %758 = vmatprep.subr.bf16.mxu1 %v1031_v0  ;;  %v804_v13 = vpack.c.bf16 %v152_v11, %v151_v10  ;;  %v154_v16 = vld [vmem:[#allocation10 + $0x48] sm:$0xff]  ;;  %v171_v19 = vld [vmem:[#allocation11 + $0x50] sm:$0xff]  ;;  %v172_v20 = vld [vmem:[#allocation11 + $0x58] sm:$0xff] }
  0x80   :  { %v807_v18 = vpack.c.bf16 %v154_v16, %v153_v15  ;;  %v155_v21 = vld [vmem:[#allocation10 + $0x50] sm:$0xff]  ;;  %v156_v22 = vld [vmem:[#allocation10 + $0x58] sm:$0xff]  ;;  %v786_v23 = vpack.c.bf16 %v172_v20, %v171_v19  ;;  %v173_v25 = vld [vmem:[#allocation11 + $0x60] sm:$0xff] }
  0x81   :  { %736 = vmatpush3.bf16.msra.mxu0 %v735_v30  ;;  %v810_v24 = vpack.c.bf16 %v156_v22, %v155_v21  ;;  %v174_v26 = vld [vmem:[#allocation11 + $0x68] sm:$0xff]  ;;  %v157_v27 = vld [vmem:[#allocation10 + $0x60] sm:$0xff]  ;;  %v176_v32 = vld [vmem:[#allocation11 + $0x78] sm:$0xff] }
  0x82   :  { %760 = vmatpush3.bf16.msra.mxu1 %v759_v31  ;;  %737 = vmatprep.subr.bf16.mxu0 %v1031_v0  ;;  %v158_v28 = vld [vmem:[#allocation10 + $0x68] sm:$0xff]  ;;  %v789_v29 = vpack.c.bf16 %v174_v26, %v173_v25  ;;  %v175_v31 = vld [vmem:[#allocation11 + $0x70] sm:$0xff]  ;;  %v160_v34 = vld [vmem:[#allocation10 + $0x78] sm:$0xff] }
  0x83   :  { %761 = vmatprep.subr.bf16.mxu1 %v1031_v0  ;;  %v813_v30 = vpack.c.bf16 %v158_v28, %v157_v27  ;;  %v159_v33 = vld [vmem:[#allocation10 + $0x70] sm:$0xff]  ;;  %v792_v35 = vpack.c.bf16 %v176_v32, %v175_v31 }
  0x84   :  { %v512_v39 = vld [vmem:[%s1254_s6] ss:$0 sm:$0xff] }
  0x85   :  { %739 = vmatpush3.bf16.msra.mxu0 %v738_v36  ;;  %v816_v36 = vpack.c.bf16 %v160_v34, %v159_v33 }
  0x86   :  { %763 = vmatpush3.bf16.msra.mxu1 %v762_v37  ;;  %740 = vmatprep.subr.bf16.mxu0 %v1031_v0 }
  0x87   :  { %764 = vmatprep.subr.bf16.mxu1 %v1031_v0 }
  0x89   :  { %742 = vmatpush3.bf16.msra.mxu0 %v741_v42 }
  0x8a   :  { %766 = vmatpush3.bf16.msra.mxu1 %v765_v43  ;;  %743 = vmatprep.subr.bf16.mxu0 %v1031_v0 }
  0x8b   :  { %767 = vmatprep.subr.bf16.mxu1 %v1031_v0 }
  0x8d   :  { %745 = vmatpush3.bf16.msra.mxu0 %v744_v48 }
  0x8e   :  { %769 = vmatpush3.bf16.msra.mxu1 %v768_v49  ;;  %770 = vmatprep.subr.bf16.mxu0 %v1031_v0 }
  0x8f   :  { %794 = vmatprep.subr.bf16.mxu1 %v1031_v0 }
  0x90   :  { %615 = vmatmul.mubr.f32.vlgmr.msra.gmra.mrb[0].mxu0 %v1190_v54 }
  0x91   :  { %650 = vmatmul.mubr.f32.vlgmr.msra.gmra.mrb[0].mxu1 %v1192_v56  ;;  %772 = vmatpush3.bf16.msra.mxu0 %v771_v55 }
  0x92   :  { %796 = vmatpush3.bf16.msra.mxu1 %v795_v57  ;;  %773 = vmatprep.subr.bf16.mxu0 %v1031_v0 }
  0x93   :  { %797 = vmatprep.subr.bf16.mxu1 %v1031_v0  ;;  %684 = vmatprep.mubr.msk.f32.mxu0 %vm1032_vm0, %v1033_v1 }
  0x94   :  { %719 = vmatprep.mubr.msk.f32.mxu1 %vm1032_vm0, %v1033_v1  ;;  %v170_v1 = vld [vmem:[#allocation11 + $0x48] sm:$0xff] }
  0x95   :  { %775 = vmatpush3.bf16.msra.mxu0 %v774_v62  ;;  %v783_v17 = vpack.c.bf16 %v170_v1, %v169_v14 }
  0x96   :  { %799 = vmatpush3.bf16.msra.mxu1 %v798_v63  ;;  %776 = vmatprep.subr.bf16.mxu0 %v1031_v0 }
  0x97   :  { %800 = vmatprep.subr.bf16.mxu1 %v1031_v0 }
  0x99   :  { %778 = vmatpush3.bf16.msra.mxu0 %v777_v6 }
  0x9a   :  { %802 = vmatpush3.bf16.msra.mxu1 %v801_v7  ;;  %779 = vmatprep.subr.bf16.mxu0 %v1031_v0 }
  0x9b   :  { %803 = vmatprep.subr.bf16.mxu1 %v1031_v0 }
  0x9d   :  { %781 = vmatpush3.bf16.msra.mxu0 %v780_v12 }
  0x9e   :  { %805 = vmatpush3.bf16.msra.mxu1 %v804_v13  ;;  %782 = vmatprep.subr.bf16.mxu0 %v1031_v0 }
  0x9f   :  { %806 = vmatprep.subr.bf16.mxu1 %v1031_v0 }
  0xa1   :  { %784 = vmatpush3.bf16.msra.mxu0 %v783_v17 }
  0xa2   :  { %808 = vmatpush3.bf16.msra.mxu1 %v807_v18  ;;  %785 = vmatprep.subr.bf16.mxu0 %v1031_v0 }
  0xa3   :  { %809 = vmatprep.subr.bf16.mxu1 %v1031_v0 }
  0xa5   :  { %787 = vmatpush3.bf16.msra.mxu0 %v786_v23 }
  0xa6   :  { %811 = vmatpush3.bf16.msra.mxu1 %v810_v24  ;;  %788 = vmatprep.subr.bf16.mxu0 %v1031_v0 }
  0xa7   :  { %812 = vmatprep.subr.bf16.mxu1 %v1031_v0 }
  0xa9   :  { %790 = vmatpush3.bf16.msra.mxu0 %v789_v29 }
  0xaa   :  { %814 = vmatpush3.bf16.msra.mxu1 %v813_v30  ;;  %791 = vmatprep.subr.bf16.mxu0 %v1031_v0 }
  0xab   :  { %815 = vmatprep.subr.bf16.mxu1 %v1031_v0 }
  0xad   :  { %793 = vmatpush3.bf16.msra.mxu0 %v792_v35 }
  0xae   :  { %817 = vmatpush3.bf16.msra.mxu1 %v816_v36 }
  0xb0   :  { %685 = vmatmul.mubr.f32.vlgmr.msra.gmra.mrb[2].mxu0 %v1190_v54 }
  0xb1   :  { %720 = vmatmul.mubr.f32.vlgmr.msra.gmra.mrb[2].mxu1 %v1192_v56 }
 0x163   :  { %v243_v37 = vpop.f32.mrb[0].mxu0 }
 0x164   :  { %v313_v38 = vpop.f32.mrb[0].mxu1  ;;  %v616_v40 = vpop.f32.mrb[1].mxu0 }
 0x165   :  { %v314_v41 = vadd.f32 %v313_v38, %v243_v37  ;;  %v651_v42 = vpop.f32.mrb[1].mxu1 }
 0x167   :  { %v324_v43 = vadd.f32 %v512_v39, %v314_v41 }
 0x169   :  { %v473_v44 = vmul.f32 0.5, %v324_v43 }
 0x16b   :  { %831 = vtanh.f32 %v473_v44 }
 0x175   :  { %v832_v45 = vpop.eup %831 }
 0x176   :  { %v475_v0 = vmul.f32 0.5, %v832_v45 }
 0x178   :  { %v476_v46 = vadd.f32 0.5, %v475_v0 }
 0x17a   :  { %477 = vst [vmem:[#allocation13] sm:$0xff] %v476_v46 }
 0x17b   :  { %978 = shalt.err (!%p975_p10)
}
 0x17c   :  { %s979_s18 = scalar_lea.hbm %s1256_s8, 128 }
 0x17d   :  { %p980_p11 = scmp.ne.s32.totalorder %s1256_s8, %s979_s18  ;;  %p983_p12 = scmp.lt.u32.totalorder %s979_s18, %s1256_s8 }
 0x17f   :  { %p985_p13 = pnand %p983_p12, %p980_p11 }
 0x181   :  { %988 = shalt.err (!%p985_p13)
}
 0x182   :  { %489 = dma.vmem_to_hbm [thread:$0]  %s487_s24, 128, %s1256_s8, [#allocation4]   ;;  %v513_v49 = vld [vmem:[%s1255_s7] ss:$0 sm:$0xff] }
 0x183   :  { %v391_v47 = vpop.f32.mrb[2].mxu0  ;;  %s1035_s26 = smov [#allocation14]  }
 0x184   :  { %v461_v48 = vpop.f32.mrb[2].mxu1  ;;  %v686_v50 = vpop.f32.mrb[3].mxu0  ;;  %s496_s27 = sshll.u32 %s1035_s26, 4  ;;  %s497_s27 = int_to_ptr.vmem [resolvable:$true] %s496_s27 }
 0x185   :  { %v462_v51 = vadd.f32 %v461_v48, %v391_v47  ;;  %v721_v52 = vpop.f32.mrb[3].mxu1  ;;  %s989_s29 = scalar_lea.vmem %s497_s27, 128  ;;  %p994_p1 = scmp.lt.s32.totalorder %s497_s27, %s497_s27 }
 0x186   :  { %p990_p0 = scmp.ne.s32.totalorder %s497_s27, %s989_s29  ;;  %p995_p2 = scmp.lt.s32.totalorder %s989_s29, %s989_s29 }
 0x187   :  { %v472_v53 = vadd.f32 %v513_v49, %v462_v51 }
 0x188   :  { %p996_p3 = por %p995_p2, %p994_p1 }
 0x189   :  { %833 = vtanh.f32 %v472_v53 }
 0x18a   :  { %p997_p4 = pnand %p996_p3, %p990_p0 }
 0x193   :  { %v834_v54 = vpop.eup %833 }
 0x194   :  { %479 = vst [vmem:[#allocation14] sm:$0xff] %v834_v54 }
 0x195   :  { %1000 = shalt.err (!%p997_p4)
}
 0x196   :  { %s1001_s7 = scalar_lea.hbm %s1257_s9, 128 }
 0x197   :  { %p1002_p5 = scmp.ne.s32.totalorder %s1257_s9, %s1001_s7  ;;  %p1005_p6 = scmp.lt.u32.totalorder %s1001_s7, %s1257_s9 }
 0x199   :  { %p1007_p7 = pnand %p1005_p6, %p1002_p5 }
 0x19b   :  { %1010 = shalt.err (!%p1007_p7)
}
 0x19c   :  { %499 = dma.vmem_to_hbm [thread:$0]  %s497_s27, 128, %s1257_s9, [#allocation15]  }
 0x19d   :  { %1019 = dma.done.wait [#allocation4], 128  }
 0x19e   :  { %1020 = vsyncadd [#allocation4], 4294967168 }
 0x19f   :  { %1021 = dma.done.wait [#allocation15], 128  }
 0x1a0   :  { %1022 = vsyncadd [#allocation15], 4294967168 }
 0x1a1   :  { %506 = vsyncpa [#allocation3], 1 }
 0x1a2   :  { %507 = vsyncpa [#allocation6], 1 }
 0x1a3   :  { %508 = vsyncpa [#allocation9], 1 }
 0x1a4   :  { %509 = vsyncpa [#allocation12], 1 }
 0x1a5   :  { %510 = vsyncpa [#allocation4], 1 }
 0x1a6   :  { %511 = vsyncpa [#allocation15], 1 }

</bundles_post_ra>
